<compile_context>
chip_gen: v6e
topology: v6e:2x2x1
jax: 0.10.0
libtpu: 0.0.40
codegen_flags: <defaults>
</compile_context>

<pallas_src>
import math
from functools import partial

import jax
import jax.numpy as jnp
from jax.experimental import pallas as pl
from jax.experimental.pallas import tpu as pltpu


# ----------------------------- shared math ---------------------------------

def _layer_norm(x, w, b, eps=1e-6):
    mu = jnp.mean(x, axis=-1, keepdims=True)
    var = jnp.mean(jnp.square(x - mu), axis=-1, keepdims=True)
    return (x - mu) * jax.lax.rsqrt(var + eps) * w + b


def _gelu_tanh(x):
    # TODO(synk): torch.nn.GELU default is the exact erf form; tanh approx used
    # here (matches the bundled JAX reference, ~1e-3 deviation from PyTorch).
    return 0.5 * x * (1.0 + jnp.tanh(0.7978845608028654 * (x + 0.044715 * x * x * x)))


# --------------------------- fused stack kernel -----------------------------

def _stack_kernel(x_ref, mask_ref,
                  ln1w_ref, ln1b_ref, wqkv_ref, bqkv_ref, wo_ref, bo_ref,
                  ln2w_ref, ln2b_ref, w1_ref, b1_ref, w2_ref, b2_ref,
                  o_ref, x_sc, ctx_sc,
                  *, num_heads, compute_dtype, approx_softmax):
    f32 = jnp.float32
    layer = pl.program_id(1)
    B_t, S, D = x_ref.shape
    N = B_t * S
    hd = D // num_heads
    scale = 1.0 / math.sqrt(hd)

    # Load the batch-tile's activations into the resident f32 scratch once.
    @pl.when(layer == 0)
    def _():
        x_sc[...] = x_ref[...].reshape(N, D).astype(f32)

    x = x_sc[...]                                  # (N, D) f32 running activations
    mask = mask_ref[...].astype(f32)               # (S, S) additive mask

    # ----- pre-LN multi-head self-attention + residual -----
    h = _layer_norm(x, ln1w_ref[0], ln1b_ref[0]).astype(compute_dtype)
    # One fused, lane-dense QKV projection; f32 accumulation + f32 bias.
    qkv = jnp.dot(h, wqkv_ref[0], preferred_element_type=f32) + bqkv_ref[0]

    # Per-(batch, head) softmax attention; context heads assembled into a
    # lane-dense (N, D) VMEM scratch so out-proj is a single matmul.
    for b in range(B_t):                           # static unroll (small B_t)
        r = b * S
        for hi in range(num_heads):                # static unroll (small H)
            lo = hi * hd
            qh = qkv[r:r + S, lo:lo + hd].astype(compute_dtype)
            kh = qkv[r:r + S, D + lo:D + lo + hd].astype(compute_dtype)
            vh = qkv[r:r + S, 2 * D + lo:2 * D + lo + hd].astype(compute_dtype)
            s = jax.lax.dot_general(qh, kh, (((1,), (1,)), ((), ())),
                                    preferred_element_type=f32) * scale + mask
            s = s - jnp.max(s, axis=-1, keepdims=True)
            e = jnp.exp(s)
            inv = pl.reciprocal(jnp.sum(e, axis=-1, keepdims=True),
                                approx=approx_softmax)
            p = (e * inv).astype(compute_dtype)
            ctx_sc[r:r + S, lo:lo + hd] = jnp.dot(p, vh,
                                                  preferred_element_type=f32)

    attn = jnp.dot(ctx_sc[...].astype(compute_dtype), wo_ref[0],
                   preferred_element_type=f32) + bo_ref[0]
    x = x + attn

    # ----- pre-LN GELU MLP + residual -----
    h2 = _layer_norm(x, ln2w_ref[0], ln2b_ref[0]).astype(compute_dtype)
    y = jnp.dot(h2, w1_ref[0], preferred_element_type=f32) + b1_ref[0]
    y = _gelu_tanh(y).astype(compute_dtype)
    y = jnp.dot(y, w2_ref[0], preferred_element_type=f32) + b2_ref[0]
    x = x + y

    x_sc[...] = x                                  # persists to next layer

    @pl.when(layer == pl.num_programs(1) - 1)
    def _():
        o_ref[...] = x.reshape(B_t, S, D).astype(o_ref.dtype)


# ------------------------------- wrapper -------------------------------------

_STACK_KEYS = ("ln1w", "ln1b", "wqkv", "bqkv", "wo", "bo",
               "ln2w", "ln2b", "w1", "b1", "w2", "b2")


def pack_layer_params(params, matmul_dtype=jnp.float32):
    """Stack per-block params along a leading layer axis; fuse QKV weights.

    Matmul weight matrices are stored in `matmul_dtype` (bf16 halves HBM
    traffic and hits the MXU's native path); LayerNorm params and biases stay
    f32 (added to f32 accumulators / used in f32 elementwise math).
    """
    f32 = jnp.float32

    def stack(key, dtype):
        return jnp.stack([p[key] for p in params]).astype(dtype)

    wqkv = jnp.stack([jnp.concatenate([p["wq"], p["wk"], p["wv"]], axis=1)
                      for p in params]).astype(matmul_dtype)
    bqkv = jnp.stack([jnp.concatenate([p["bq"], p["bk"], p["bv"]], axis=1)
                      for p in params]).astype(f32)
    return {
        "ln1w": stack("ln1w", f32), "ln1b": stack("ln1b", f32),
        "wqkv": wqkv, "bqkv": bqkv,
        "wo": stack("wo", matmul_dtype), "bo": stack("bo", f32),
        "ln2w": stack("ln2w", f32), "ln2b": stack("ln2b", f32),
        "w1": stack("w1", matmul_dtype), "b1": stack("b1", f32),
        "w2": stack("w2", matmul_dtype), "b2": stack("b2", f32),
    }


def simple_transformer_forward(tokens, attn_mask, stacked, num_heads,
                               batch_tile=None, approx_softmax=None):
    """SimpleTransformer.forward (pre/post_transformer_layer = None).

    One pallas_call for the whole block stack: grid = (batch_tiles, layers).
    """
    B, S, D = tokens.shape
    L = stacked["wqkv"].shape[0]
    compute_dtype = stacked["wqkv"].dtype
    if approx_softmax is None:
        approx_softmax = compute_dtype != jnp.float32
    if batch_tile is None:
        # >= 2 batch tiles keeps both v7x TensorCores busy; at production sizes
        # pick batch_tile so one tile fills roughly half the scoped VMEM.
        batch_tile = max(1, B // 2)
    assert B % batch_tile == 0, "batch must be divisible by batch_tile"
    n_bt = B // batch_tile

    weights = [stacked[k] for k in _STACK_KEYS]

    x_spec = pl.BlockSpec((batch_tile, S, D), lambda bt, l: (bt, 0, 0))
    mask_spec = pl.BlockSpec(attn_mask.shape, lambda bt, l: (0, 0))
    w_specs = [pl.BlockSpec((1,) + w.shape[1:], lambda bt, l: (l, 0, 0))
               for w in weights]

    kernel = partial(_stack_kernel, num_heads=num_heads,
                     compute_dtype=compute_dtype, approx_softmax=approx_softmax)

    return pl.pallas_call(
        kernel,
        out_shape=jax.ShapeDtypeStruct((B, S, D), tokens.dtype),
        grid_spec=pltpu.PrefetchScalarGridSpec(
            num_scalar_prefetch=0,
            grid=(n_bt, L),
            in_specs=[x_spec, mask_spec] + w_specs,
            out_specs=pl.BlockSpec((batch_tile, S, D), lambda bt, l: (bt, 0, 0)),
            scratch_shapes=[
                pltpu.VMEM((batch_tile * S, D), jnp.float32),   # resident activations
                pltpu.VMEM((batch_tile * S, D), jnp.float32),   # assembled ctx heads
            ],
        ),
        compiler_params=pltpu.CompilerParams(
            dimension_semantics=("parallel", "arbitrary"),
            vmem_limit_bytes=64 * 1024 * 1024,
        ),
    )(tokens, attn_mask, *weights)


# ------------------------------ reference -----------------------------------

def _block_reference(x, mask, p, num_heads):
    D = x.shape[-1]
    hd = D // num_heads
    scale = 1.0 / math.sqrt(hd)
    h = _layer_norm(x, p["ln1w"], p["ln1b"])
    q = h @ p["wq"] + p["bq"]
    k = h @ p["wk"] + p["bk"]
    v = h @ p["wv"] + p["bv"]
    attn = jnp.zeros_like(x)
    for hi in range(num_heads):
        lo = hi * hd
        qh, kh, vh = q[..., lo:lo + hd], k[..., lo:lo + hd], v[..., lo:lo + hd]
        s = jnp.einsum("bqd,bkd->bqk", qh, kh) * scale + mask[None]
        s = s - jnp.max(s, axis=-1, keepdims=True)
        e = jnp.exp(s)
        pr = e / jnp.sum(e, axis=-1, keepdims=True)
        ctx = jnp.einsum("bqk,bkd->bqd", pr, vh)
        attn = attn + ctx @ p["wo"][lo:lo + hd, :]
    x = x + attn + p["bo"]
    h2 = _layer_norm(x, p["ln2w"], p["ln2b"])
    y = _gelu_tanh(h2 @ p["w1"] + p["b1"]) @ p["w2"] + p["b2"]
    return x + y


def simple_transformer_reference(tokens, mask, params, num_heads):
    x = tokens
    for p in params:
        x = _block_reference(x, mask, p, num_heads)
    return x


# ------------------------------ param init ----------------------------------

def init_params(key, num_blocks, d, mlp_ratio=4):
    hidden = mlp_ratio * d

    def xavier(k, shape):
        lim = math.sqrt(6.0 / (shape[0] + shape[1]))
        return jax.random.uniform(k, shape, jnp.float32, -lim, lim)

    def small(k, shape):
        return 0.02 * jax.random.normal(k, shape, jnp.float32)

    params = []
    for _ in range(num_blocks):
        key, *ks = jax.random.split(key, 15)
        params.append({
            "ln1w": 1.0 + small(ks[0], (1, d)), "ln1b": small(ks[1], (1, d)),
            "wq": xavier(ks[2], (d, d)), "bq": small(ks[3], (1, d)),
            "wk": xavier(ks[4], (d, d)), "bk": small(ks[5], (1, d)),
            "wv": xavier(ks[6], (d, d)), "bv": small(ks[7], (1, d)),
            "wo": xavier(ks[8], (d, d)), "bo": small(ks[9], (1, d)),
            "ln2w": 1.0 + small(ks[10], (1, d)), "ln2b": small(ks[11], (1, d)),
            "w1": xavier(ks[12], (d, hidden)), "b1": jnp.zeros((1, hidden), jnp.float32),
            "w2": xavier(ks[13], (hidden, d)), "b2": jnp.zeros((1, d), jnp.float32),
        })
    return params


# --------------------------------- main --------------------------------------

if __name__ == "__main__":
    B, S, D = 2, 8, 32            # batch=2, seq=8, embed_dim=32
    num_heads, num_blocks, mlp_ratio = 4, 2, 4

    key = jax.random.PRNGKey(0)
    kx, kp = jax.random.split(key)
    tokens = jax.random.normal(kx, (B, S, D), dtype=jnp.float32)

    # additive causal mask (S, S): 0 on/below diagonal, large negative above
    causal = jnp.where(jnp.tril(jnp.ones((S, S), dtype=bool)),
                       0.0, -1e9).astype(jnp.float32)

    params = init_params(kp, num_blocks, D, mlp_ratio)

    with jax.default_matmul_precision("float32"):
        ref = jax.block_until_ready(
            simple_transformer_reference(tokens, causal, params, num_heads))

    # --- full-f32 path: tight correctness check ---
    stacked_f32 = pack_layer_params(params, jnp.float32)
    out = jax.block_until_ready(
        simple_transformer_forward(tokens, causal, stacked_f32, num_heads))
    assert out.shape == (B, S, D)
    err = float(jnp.max(jnp.abs(out - ref)))
    assert jnp.allclose(out, ref, atol=1e-3, rtol=1e-3), \
        f"f32 mismatch, max_err={err}"

    # --- bf16 MXU path (bf16 weights/matmul inputs, f32 accumulation) ---
    stacked_bf16 = pack_layer_params(params, jnp.bfloat16)
    out_bf16 = jax.block_until_ready(
        simple_transformer_forward(tokens, causal, stacked_bf16, num_heads))
    err_bf16 = float(jnp.max(jnp.abs(out_bf16 - ref)))
    assert jnp.allclose(out_bf16, ref, atol=1e-1, rtol=1e-1), \
        f"bf16 mismatch, max_err={err_bf16}"

    print("KERNEL_OK")
</pallas_src>

<mosaic_0001>
module attributes {stable_mosaic.version = 11 : i64} {
  func.func @_stack_kernel(%arg0: i32, %arg1: i32, %arg2: memref<1x8x32xf32, #tpu.memory_space<vmem>>, %arg3: memref<8x8xf32, #tpu.memory_space<vmem>>, %arg4: memref<1x1x32xf32, #tpu.memory_space<vmem>>, %arg5: memref<1x1x32xf32, #tpu.memory_space<vmem>>, %arg6: memref<1x32x96xf32, #tpu.memory_space<vmem>>, %arg7: memref<1x1x96xf32, #tpu.memory_space<vmem>>, %arg8: memref<1x32x32xf32, #tpu.memory_space<vmem>>, %arg9: memref<1x1x32xf32, #tpu.memory_space<vmem>>, %arg10: memref<1x1x32xf32, #tpu.memory_space<vmem>>, %arg11: memref<1x1x32xf32, #tpu.memory_space<vmem>>, %arg12: memref<1x32x128xf32, #tpu.memory_space<vmem>>, %arg13: memref<1x1x128xf32, #tpu.memory_space<vmem>>, %arg14: memref<1x128x32xf32, #tpu.memory_space<vmem>>, %arg15: memref<1x1x32xf32, #tpu.memory_space<vmem>>, %arg16: memref<1x8x32xf32, #tpu.memory_space<vmem>>, %arg17: memref<8x32xf32, #tpu.memory_space<vmem>>, %arg18: memref<8x32xf32, #tpu.memory_space<vmem>>) attributes {dimension_semantics = [#tpu.dimension_semantics<parallel>, #tpu.dimension_semantics<arbitrary>], iteration_bounds = array<i64: 2, 2>, scalar_prefetch = 0 : i64, scratch_operands = 2 : i64, tpu.core_type = #tpu.core_type<tc>, window_params = [{transform_indices = @transform_0, window_bounds = array<i64: 1, 8, 32>}, {pipeline_mode = #tpu.pipeline_mode<synchronous>, transform_indices = @transform_1, window_bounds = array<i64: 8, 8>}, {transform_indices = @transform_2, window_bounds = array<i64: 1, 1, 32>}, {transform_indices = @transform_3, window_bounds = array<i64: 1, 1, 32>}, {transform_indices = @transform_4, window_bounds = array<i64: 1, 32, 96>}, {transform_indices = @transform_5, window_bounds = array<i64: 1, 1, 96>}, {transform_indices = @transform_6, window_bounds = array<i64: 1, 32, 32>}, {transform_indices = @transform_7, window_bounds = array<i64: 1, 1, 32>}, {transform_indices = @transform_8, window_bounds = array<i64: 1, 1, 32>}, {transform_indices = @transform_9, window_bounds = array<i64: 1, 1, 32>}, {transform_indices = @transform_10, window_bounds = array<i64: 1, 32, 128>}, {transform_indices = @transform_11, window_bounds = array<i64: 1, 1, 128>}, {transform_indices = @transform_12, window_bounds = array<i64: 1, 128, 32>}, {transform_indices = @transform_13, window_bounds = array<i64: 1, 1, 32>}, {transform_indices = @transform_14, window_bounds = array<i64: 1, 8, 32>}]} {
    %c0_i32 = arith.constant 0 : i32
    %0 = arith.cmpi eq, %arg1, %c0_i32 : i32
    %1 = arith.extui %0 : i1 to i32
    %c0_i32_0 = arith.constant 0 : i32
    %2 = arith.cmpi ne, %1, %c0_i32_0 : i32
    scf.if %2 {
      %c0_87 = arith.constant 0 : index
      %c0_88 = arith.constant 0 : index
      %c0_89 = arith.constant 0 : index
      %181 = vector.load %arg2[%c0_87, %c0_88, %c0_89] : memref<1x8x32xf32, #tpu.memory_space<vmem>>, vector<1x8x32xf32>
      %182 = vector.shape_cast %181 : vector<1x8x32xf32> to vector<8x32xf32>
      %c0_90 = arith.constant 0 : index
      %c0_91 = arith.constant 0 : index
      %183 = vector.load %arg17[%c0_90, %c0_91] : memref<8x32xf32, #tpu.memory_space<vmem>>, vector<8x32xf32>
      tpu.vector_store %arg17[%c0_90, %c0_91], %182 {strides = array<i32>} : memref<8x32xf32, #tpu.memory_space<vmem>>, vector<8x32xf32>,
    } else {
    }
    %c0 = arith.constant 0 : index
    %c0_1 = arith.constant 0 : index
    %3 = vector.load %arg17[%c0, %c0_1] : memref<8x32xf32, #tpu.memory_space<vmem>>, vector<8x32xf32>
    %c0_2 = arith.constant 0 : index
    %c0_3 = arith.constant 0 : index
    %4 = vector.load %arg3[%c0_2, %c0_3] : memref<8x8xf32, #tpu.memory_space<vmem>>, vector<8x8xf32>
    %c0_4 = arith.constant 0 : index
    %c0_5 = arith.constant 0 : index
    %c0_6 = arith.constant 0 : index
    %5 = vector.load %arg4[%c0_4, %c0_5, %c0_6] : memref<1x1x32xf32, #tpu.memory_space<vmem>>, vector<1x1x32xf32>
    %6 = vector.shape_cast %5 : vector<1x1x32xf32> to vector<1x32xf32>
    %c0_7 = arith.constant 0 : index
    %c0_8 = arith.constant 0 : index
    %c0_9 = arith.constant 0 : index
    %7 = vector.load %arg5[%c0_7, %c0_8, %c0_9] : memref<1x1x32xf32, #tpu.memory_space<vmem>>, vector<1x1x32xf32>
    %8 = vector.shape_cast %7 : vector<1x1x32xf32> to vector<1x32xf32>
    %cst = arith.constant dense<0.000000e+00> : vector<8xf32>
    %9 = vector.multi_reduction <add>, %3, %cst [1] : vector<8x32xf32> to vector<8xf32>
    %10 = vector.shape_cast %9 : vector<8xf32> to vector<8x1xf32>
    %cst_10 = arith.constant 3.200000e+01 : f32
    %11 = vector.broadcast %cst_10 : f32 to vector<8x1xf32>
    %12 = arith.divf %10, %11 : vector<8x1xf32>
    %13 = vector.broadcast %12 : vector<8x1xf32> to vector<8x32xf32>
    %14 = arith.subf %3, %13 : vector<8x32xf32>
    %15 = arith.mulf %14, %14 : vector<8x32xf32>
    %cst_11 = arith.constant dense<0.000000e+00> : vector<8xf32>
    %16 = vector.multi_reduction <add>, %15, %cst_11 [1] : vector<8x32xf32> to vector<8xf32>
    %17 = vector.shape_cast %16 : vector<8xf32> to vector<8x1xf32>
    %cst_12 = arith.constant 3.200000e+01 : f32
    %18 = vector.broadcast %cst_12 : f32 to vector<8x1xf32>
    %19 = arith.divf %17, %18 : vector<8x1xf32>
    %20 = vector.broadcast %12 : vector<8x1xf32> to vector<8x32xf32>
    %21 = arith.subf %3, %20 : vector<8x32xf32>
    %cst_13 = arith.constant 9.99999997E-7 : f32
    %22 = vector.broadcast %cst_13 : f32 to vector<8x1xf32>
    %23 = arith.addf %19, %22 : vector<8x1xf32>
    %24 = math.rsqrt %23 : vector<8x1xf32>
    %25 = vector.broadcast %24 : vector<8x1xf32> to vector<8x32xf32>
    %26 = arith.mulf %21, %25 : vector<8x32xf32>
    %27 = vector.broadcast %6 : vector<1x32xf32> to vector<8x32xf32>
    %28 = arith.mulf %26, %27 : vector<8x32xf32>
    %29 = vector.broadcast %8 : vector<1x32xf32> to vector<8x32xf32>
    %30 = arith.addf %28, %29 : vector<8x32xf32>
    %c0_14 = arith.constant 0 : index
    %c0_15 = arith.constant 0 : index
    %c0_16 = arith.constant 0 : index
    %31 = vector.load %arg6[%c0_14, %c0_15, %c0_16] : memref<1x32x96xf32, #tpu.memory_space<vmem>>, vector<1x32x96xf32>
    %32 = vector.shape_cast %31 : vector<1x32x96xf32> to vector<32x96xf32>
    %cst_17 = arith.constant dense<0.000000e+00> : vector<8x96xf32>
    %33 = tpu.matmul %30, %32, %cst_17 {dimension_numbers = #tpu.dot_dimension_numbers<[1], [0], [0], [1], [0, 0, 1, 1], [], []>} : vector<8x32xf32>, vector<32x96xf32>, vector<8x96xf32> -> vector<8x96xf32>
    %c0_18 = arith.constant 0 : index
    %c0_19 = arith.constant 0 : index
    %c0_20 = arith.constant 0 : index
    %34 = vector.load %arg7[%c0_18, %c0_19, %c0_20] : memref<1x1x96xf32, #tpu.memory_space<vmem>>, vector<1x1x96xf32>
    %35 = vector.shape_cast %34 : vector<1x1x96xf32> to vector<1x96xf32>
    %36 = vector.broadcast %35 : vector<1x96xf32> to vector<8x96xf32>
    %37 = arith.addf %33, %36 : vector<8x96xf32>
    %38 = vector.extract_strided_slice %37 {offsets = [0, 0], sizes = [8, 8], strides = [1, 1]} : vector<8x96xf32> to vector<8x8xf32>
    %39 = vector.extract_strided_slice %37 {offsets = [0, 32], sizes = [8, 8], strides = [1, 1]} : vector<8x96xf32> to vector<8x8xf32>
    %40 = vector.extract_strided_slice %37 {offsets = [0, 64], sizes = [8, 8], strides = [1, 1]} : vector<8x96xf32> to vector<8x8xf32>
    %cst_21 = arith.constant dense<0.000000e+00> : vector<8x8xf32>
    %41 = tpu.matmul %38, %39, %cst_21 {dimension_numbers = #tpu.dot_dimension_numbers<[1], [1], [0], [0], [0, 0, 1, 0], [], []>} : vector<8x8xf32>, vector<8x8xf32>, vector<8x8xf32> -> vector<8x8xf32>
    %cst_22 = arith.constant 0.353553385 : f32
    %42 = vector.broadcast %cst_22 : f32 to vector<8x8xf32>
    %43 = arith.mulf %41, %42 : vector<8x8xf32>
    %44 = arith.addf %43, %4 : vector<8x8xf32>
    %cst_23 = arith.constant dense<0xFF800000> : vector<8xf32>
    %45 = vector.multi_reduction <maximumf>, %44, %cst_23 [1] : vector<8x8xf32> to vector<8xf32>
    %46 = vector.shape_cast %45 : vector<8xf32> to vector<8x1xf32>
    %47 = vector.broadcast %46 : vector<8x1xf32> to vector<8x8xf32>
    %48 = arith.subf %44, %47 : vector<8x8xf32>
    %49 = math.exp %48 : vector<8x8xf32>
    %cst_24 = arith.constant dense<0.000000e+00> : vector<8xf32>
    %50 = vector.multi_reduction <add>, %49, %cst_24 [1] : vector<8x8xf32> to vector<8xf32>
    %51 = vector.shape_cast %50 : vector<8xf32> to vector<8x1xf32>
    %52 = tpu.reciprocal %51 : vector<8x1xf32> -> vector<8x1xf32>
    %53 = vector.broadcast %52 : vector<8x1xf32> to vector<8x8xf32>
    %54 = arith.mulf %49, %53 : vector<8x8xf32>
    %cst_25 = arith.constant dense<0.000000e+00> : vector<8x8xf32>
    %55 = tpu.matmul %54, %40, %cst_25 {dimension_numbers = #tpu.dot_dimension_numbers<[1], [0], [0], [1], [0, 0, 1, 1], [], []>} : vector<8x8xf32>, vector<8x8xf32>, vector<8x8xf32> -> vector<8x8xf32>
    %c0_26 = arith.constant 0 : index
    %c0_27 = arith.constant 0 : index
    %56 = vector.load %arg18[%c0_26, %c0_27] : memref<8x32xf32, #tpu.memory_space<vmem>>, vector<8x8xf32>
    tpu.vector_store %arg18[%c0_26, %c0_27], %55 {strides = array<i32>} : memref<8x32xf32, #tpu.memory_space<vmem>>, vector<8x8xf32>,
    %57 = vector.extract_strided_slice %37 {offsets = [0, 8], sizes = [8, 8], strides = [1, 1]} : vector<8x96xf32> to vector<8x8xf32>
    %58 = vector.extract_strided_slice %37 {offsets = [0, 40], sizes = [8, 8], strides = [1, 1]} : vector<8x96xf32> to vector<8x8xf32>
    %59 = vector.extract_strided_slice %37 {offsets = [0, 72], sizes = [8, 8], strides = [1, 1]} : vector<8x96xf32> to vector<8x8xf32>
    %cst_28 = arith.constant dense<0.000000e+00> : vector<8x8xf32>
    %60 = tpu.matmul %57, %58, %cst_28 {dimension_numbers = #tpu.dot_dimension_numbers<[1], [1], [0], [0], [0, 0, 1, 0], [], []>} : vector<8x8xf32>, vector<8x8xf32>, vector<8x8xf32> -> vector<8x8xf32>
    %cst_29 = arith.constant 0.353553385 : f32
    %61 = vector.broadcast %cst_29 : f32 to vector<8x8xf32>
    %62 = arith.mulf %60, %61 : vector<8x8xf32>
    %63 = arith.addf %62, %4 : vector<8x8xf32>
    %cst_30 = arith.constant dense<0xFF800000> : vector<8xf32>
    %64 = vector.multi_reduction <maximumf>, %63, %cst_30 [1] : vector<8x8xf32> to vector<8xf32>
    %65 = vector.shape_cast %64 : vector<8xf32> to vector<8x1xf32>
    %66 = vector.broadcast %65 : vector<8x1xf32> to vector<8x8xf32>
    %67 = arith.subf %63, %66 : vector<8x8xf32>
    %68 = math.exp %67 : vector<8x8xf32>
    %cst_31 = arith.constant dense<0.000000e+00> : vector<8xf32>
    %69 = vector.multi_reduction <add>, %68, %cst_31 [1] : vector<8x8xf32> to vector<8xf32>
    %70 = vector.shape_cast %69 : vector<8xf32> to vector<8x1xf32>
    %71 = tpu.reciprocal %70 : vector<8x1xf32> -> vector<8x1xf32>
    %72 = vector.broadcast %71 : vector<8x1xf32> to vector<8x8xf32>
    %73 = arith.mulf %68, %72 : vector<8x8xf32>
    %cst_32 = arith.constant dense<0.000000e+00> : vector<8x8xf32>
    %74 = tpu.matmul %73, %59, %cst_32 {dimension_numbers = #tpu.dot_dimension_numbers<[1], [0], [0], [1], [0, 0, 1, 1], [], []>} : vector<8x8xf32>, vector<8x8xf32>, vector<8x8xf32> -> vector<8x8xf32>
    %c0_33 = arith.constant 0 : index
    %c8 = arith.constant 8 : index
    %75 = vector.load %arg18[%c0_33, %c8] : memref<8x32xf32, #tpu.memory_space<vmem>>, vector<8x8xf32>
    tpu.vector_store %arg18[%c0_33, %c8], %74 {strides = array<i32>} : memref<8x32xf32, #tpu.memory_space<vmem>>, vector<8x8xf32>,
    %76 = vector.extract_strided_slice %37 {offsets = [0, 16], sizes = [8, 8], strides = [1, 1]} : vector<8x96xf32> to vector<8x8xf32>
    %77 = vector.extract_strided_slice %37 {offsets = [0, 48], sizes = [8, 8], strides = [1, 1]} : vector<8x96xf32> to vector<8x8xf32>
    %78 = vector.extract_strided_slice %37 {offsets = [0, 80], sizes = [8, 8], strides = [1, 1]} : vector<8x96xf32> to vector<8x8xf32>
    %cst_34 = arith.constant dense<0.000000e+00> : vector<8x8xf32>
    %79 = tpu.matmul %76, %77, %cst_34 {dimension_numbers = #tpu.dot_dimension_numbers<[1], [1], [0], [0], [0, 0, 1, 0], [], []>} : vector<8x8xf32>, vector<8x8xf32>, vector<8x8xf32> -> vector<8x8xf32>
    %cst_35 = arith.constant 0.353553385 : f32
    %80 = vector.broadcast %cst_35 : f32 to vector<8x8xf32>
    %81 = arith.mulf %79, %80 : vector<8x8xf32>
    %82 = arith.addf %81, %4 : vector<8x8xf32>
    %cst_36 = arith.constant dense<0xFF800000> : vector<8xf32>
    %83 = vector.multi_reduction <maximumf>, %82, %cst_36 [1] : vector<8x8xf32> to vector<8xf32>
    %84 = vector.shape_cast %83 : vector<8xf32> to vector<8x1xf32>
    %85 = vector.broadcast %84 : vector<8x1xf32> to vector<8x8xf32>
    %86 = arith.subf %82, %85 : vector<8x8xf32>
    %87 = math.exp %86 : vector<8x8xf32>
    %cst_37 = arith.constant dense<0.000000e+00> : vector<8xf32>
    %88 = vector.multi_reduction <add>, %87, %cst_37 [1] : vector<8x8xf32> to vector<8xf32>
    %89 = vector.shape_cast %88 : vector<8xf32> to vector<8x1xf32>
    %90 = tpu.reciprocal %89 : vector<8x1xf32> -> vector<8x1xf32>
    %91 = vector.broadcast %90 : vector<8x1xf32> to vector<8x8xf32>
    %92 = arith.mulf %87, %91 : vector<8x8xf32>
    %cst_38 = arith.constant dense<0.000000e+00> : vector<8x8xf32>
    %93 = tpu.matmul %92, %78, %cst_38 {dimension_numbers = #tpu.dot_dimension_numbers<[1], [0], [0], [1], [0, 0, 1, 1], [], []>} : vector<8x8xf32>, vector<8x8xf32>, vector<8x8xf32> -> vector<8x8xf32>
    %c0_39 = arith.constant 0 : index
    %c16 = arith.constant 16 : index
    %94 = vector.load %arg18[%c0_39, %c16] : memref<8x32xf32, #tpu.memory_space<vmem>>, vector<8x8xf32>
    tpu.vector_store %arg18[%c0_39, %c16], %93 {strides = array<i32>} : memref<8x32xf32, #tpu.memory_space<vmem>>, vector<8x8xf32>,
    %95 = vector.extract_strided_slice %37 {offsets = [0, 24], sizes = [8, 8], strides = [1, 1]} : vector<8x96xf32> to vector<8x8xf32>
    %96 = vector.extract_strided_slice %37 {offsets = [0, 56], sizes = [8, 8], strides = [1, 1]} : vector<8x96xf32> to vector<8x8xf32>
    %97 = vector.extract_strided_slice %37 {offsets = [0, 88], sizes = [8, 8], strides = [1, 1]} : vector<8x96xf32> to vector<8x8xf32>
    %cst_40 = arith.constant dense<0.000000e+00> : vector<8x8xf32>
    %98 = tpu.matmul %95, %96, %cst_40 {dimension_numbers = #tpu.dot_dimension_numbers<[1], [1], [0], [0], [0, 0, 1, 0], [], []>} : vector<8x8xf32>, vector<8x8xf32>, vector<8x8xf32> -> vector<8x8xf32>
    %cst_41 = arith.constant 0.353553385 : f32
    %99 = vector.broadcast %cst_41 : f32 to vector<8x8xf32>
    %100 = arith.mulf %98, %99 : vector<8x8xf32>
    %101 = arith.addf %100, %4 : vector<8x8xf32>
    %cst_42 = arith.constant dense<0xFF800000> : vector<8xf32>
    %102 = vector.multi_reduction <maximumf>, %101, %cst_42 [1] : vector<8x8xf32> to vector<8xf32>
    %103 = vector.shape_cast %102 : vector<8xf32> to vector<8x1xf32>
    %104 = vector.broadcast %103 : vector<8x1xf32> to vector<8x8xf32>
    %105 = arith.subf %101, %104 : vector<8x8xf32>
    %106 = math.exp %105 : vector<8x8xf32>
    %cst_43 = arith.constant dense<0.000000e+00> : vector<8xf32>
    %107 = vector.multi_reduction <add>, %106, %cst_43 [1] : vector<8x8xf32> to vector<8xf32>
    %108 = vector.shape_cast %107 : vector<8xf32> to vector<8x1xf32>
    %109 = tpu.reciprocal %108 : vector<8x1xf32> -> vector<8x1xf32>
    %110 = vector.broadcast %109 : vector<8x1xf32> to vector<8x8xf32>
    %111 = arith.mulf %106, %110 : vector<8x8xf32>
    %cst_44 = arith.constant dense<0.000000e+00> : vector<8x8xf32>
    %112 = tpu.matmul %111, %97, %cst_44 {dimension_numbers = #tpu.dot_dimension_numbers<[1], [0], [0], [1], [0, 0, 1, 1], [], []>} : vector<8x8xf32>, vector<8x8xf32>, vector<8x8xf32> -> vector<8x8xf32>
    %c0_45 = arith.constant 0 : index
    %c24 = arith.constant 24 : index
    %113 = vector.load %arg18[%c0_45, %c24] : memref<8x32xf32, #tpu.memory_space<vmem>>, vector<8x8xf32>
    tpu.vector_store %arg18[%c0_45, %c24], %112 {strides = array<i32>} : memref<8x32xf32, #tpu.memory_space<vmem>>, vector<8x8xf32>,
    %c0_46 = arith.constant 0 : index
    %c0_47 = arith.constant 0 : index
    %114 = vector.load %arg18[%c0_46, %c0_47] : memref<8x32xf32, #tpu.memory_space<vmem>>, vector<8x32xf32>
    %c0_48 = arith.constant 0 : index
    %c0_49 = arith.constant 0 : index
    %c0_50 = arith.constant 0 : index
    %115 = vector.load %arg8[%c0_48, %c0_49, %c0_50] : memref<1x32x32xf32, #tpu.memory_space<vmem>>, vector<1x32x32xf32>
    %116 = vector.shape_cast %115 : vector<1x32x32xf32> to vector<32x32xf32>
    %cst_51 = arith.constant dense<0.000000e+00> : vector<8x32xf32>
    %117 = tpu.matmul %114, %116, %cst_51 {dimension_numbers = #tpu.dot_dimension_numbers<[1], [0], [0], [1], [0, 0, 1, 1], [], []>} : vector<8x32xf32>, vector<32x32xf32>, vector<8x32xf32> -> vector<8x32xf32>
    %c0_52 = arith.constant 0 : index
    %c0_53 = arith.constant 0 : index
    %c0_54 = arith.constant 0 : index
    %118 = vector.load %arg9[%c0_52, %c0_53, %c0_54] : memref<1x1x32xf32, #tpu.memory_space<vmem>>, vector<1x1x32xf32>
    %119 = vector.shape_cast %118 : vector<1x1x32xf32> to vector<1x32xf32>
    %120 = vector.broadcast %119 : vector<1x32xf32> to vector<8x32xf32>
    %121 = arith.addf %117, %120 : vector<8x32xf32>
    %122 = arith.addf %3, %121 : vector<8x32xf32>
    %c0_55 = arith.constant 0 : index
    %c0_56 = arith.constant 0 : index
    %c0_57 = arith.constant 0 : index
    %123 = vector.load %arg10[%c0_55, %c0_56, %c0_57] : memref<1x1x32xf32, #tpu.memory_space<vmem>>, vector<1x1x32xf32>
    %124 = vector.shape_cast %123 : vector<1x1x32xf32> to vector<1x32xf32>
    %c0_58 = arith.constant 0 : index
    %c0_59 = arith.constant 0 : index
    %c0_60 = arith.constant 0 : index
    %125 = vector.load %arg11[%c0_58, %c0_59, %c0_60] : memref<1x1x32xf32, #tpu.memory_space<vmem>>, vector<1x1x32xf32>
    %126 = vector.shape_cast %125 : vector<1x1x32xf32> to vector<1x32xf32>
    %cst_61 = arith.constant dense<0.000000e+00> : vector<8xf32>
    %127 = vector.multi_reduction <add>, %122, %cst_61 [1] : vector<8x32xf32> to vector<8xf32>
    %128 = vector.shape_cast %127 : vector<8xf32> to vector<8x1xf32>
    %cst_62 = arith.constant 3.200000e+01 : f32
    %129 = vector.broadcast %cst_62 : f32 to vector<8x1xf32>
    %130 = arith.divf %128, %129 : vector<8x1xf32>
    %131 = vector.broadcast %130 : vector<8x1xf32> to vector<8x32xf32>
    %132 = arith.subf %122, %131 : vector<8x32xf32>
    %133 = arith.mulf %132, %132 : vector<8x32xf32>
    %cst_63 = arith.constant dense<0.000000e+00> : vector<8xf32>
    %134 = vector.multi_reduction <add>, %133, %cst_63 [1] : vector<8x32xf32> to vector<8xf32>
    %135 = vector.shape_cast %134 : vector<8xf32> to vector<8x1xf32>
    %cst_64 = arith.constant 3.200000e+01 : f32
    %136 = vector.broadcast %cst_64 : f32 to vector<8x1xf32>
    %137 = arith.divf %135, %136 : vector<8x1xf32>
    %138 = vector.broadcast %130 : vector<8x1xf32> to vector<8x32xf32>
    %139 = arith.subf %122, %138 : vector<8x32xf32>
    %cst_65 = arith.constant 9.99999997E-7 : f32
    %140 = vector.broadcast %cst_65 : f32 to vector<8x1xf32>
    %141 = arith.addf %137, %140 : vector<8x1xf32>
    %142 = math.rsqrt %141 : vector<8x1xf32>
    %143 = vector.broadcast %142 : vector<8x1xf32> to vector<8x32xf32>
    %144 = arith.mulf %139, %143 : vector<8x32xf32>
    %145 = vector.broadcast %124 : vector<1x32xf32> to vector<8x32xf32>
    %146 = arith.mulf %144, %145 : vector<8x32xf32>
    %147 = vector.broadcast %126 : vector<1x32xf32> to vector<8x32xf32>
    %148 = arith.addf %146, %147 : vector<8x32xf32>
    %c0_66 = arith.constant 0 : index
    %c0_67 = arith.constant 0 : index
    %c0_68 = arith.constant 0 : index
    %149 = vector.load %arg12[%c0_66, %c0_67, %c0_68] : memref<1x32x128xf32, #tpu.memory_space<vmem>>, vector<1x32x128xf32>
    %150 = vector.shape_cast %149 : vector<1x32x128xf32> to vector<32x128xf32>
    %cst_69 = arith.constant dense<0.000000e+00> : vector<8x128xf32>
    %151 = tpu.matmul %148, %150, %cst_69 {dimension_numbers = #tpu.dot_dimension_numbers<[1], [0], [0], [1], [0, 0, 1, 1], [], []>} : vector<8x32xf32>, vector<32x128xf32>, vector<8x128xf32> -> vector<8x128xf32>
    %c0_70 = arith.constant 0 : index
    %c0_71 = arith.constant 0 : index
    %c0_72 = arith.constant 0 : index
    %152 = vector.load %arg13[%c0_70, %c0_71, %c0_72] : memref<1x1x128xf32, #tpu.memory_space<vmem>>, vector<1x1x128xf32>
    %153 = vector.shape_cast %152 : vector<1x1x128xf32> to vector<1x128xf32>
    %154 = vector.broadcast %153 : vector<1x128xf32> to vector<8x128xf32>
    %155 = arith.addf %151, %154 : vector<8x128xf32>
    %cst_73 = arith.constant 5.000000e-01 : f32
    %156 = vector.broadcast %cst_73 : f32 to vector<8x128xf32>
    %157 = arith.mulf %156, %155 : vector<8x128xf32>
    %cst_74 = arith.constant 4.471500e-02 : f32
    %158 = vector.broadcast %cst_74 : f32 to vector<8x128xf32>
    %159 = arith.mulf %158, %155 : vector<8x128xf32>
    %160 = arith.mulf %159, %155 : vector<8x128xf32>
    %161 = arith.mulf %160, %155 : vector<8x128xf32>
    %162 = arith.addf %155, %161 : vector<8x128xf32>
    %cst_75 = arith.constant 0.797884583 : f32
    %163 = vector.broadcast %cst_75 : f32 to vector<8x128xf32>
    %164 = arith.mulf %163, %162 : vector<8x128xf32>
    %165 = math.tanh %164 : vector<8x128xf32>
    %cst_76 = arith.constant 1.000000e+00 : f32
    %166 = vector.broadcast %cst_76 : f32 to vector<8x128xf32>
    %167 = arith.addf %166, %165 : vector<8x128xf32>
    %168 = arith.mulf %157, %167 : vector<8x128xf32>
    %c0_77 = arith.constant 0 : index
    %c0_78 = arith.constant 0 : index
    %c0_79 = arith.constant 0 : index
    %169 = vector.load %arg14[%c0_77, %c0_78, %c0_79] : memref<1x128x32xf32, #tpu.memory_space<vmem>>, vector<1x128x32xf32>
    %170 = vector.shape_cast %169 : vector<1x128x32xf32> to vector<128x32xf32>
    %cst_80 = arith.constant dense<0.000000e+00> : vector<8x32xf32>
    %171 = tpu.matmul %168, %170, %cst_80 {dimension_numbers = #tpu.dot_dimension_numbers<[1], [0], [0], [1], [0, 0, 1, 1], [], []>} : vector<8x128xf32>, vector<128x32xf32>, vector<8x32xf32> -> vector<8x32xf32>
    %c0_81 = arith.constant 0 : index
    %c0_82 = arith.constant 0 : index
    %c0_83 = arith.constant 0 : index
    %172 = vector.load %arg15[%c0_81, %c0_82, %c0_83] : memref<1x1x32xf32, #tpu.memory_space<vmem>>, vector<1x1x32xf32>
    %173 = vector.shape_cast %172 : vector<1x1x32xf32> to vector<1x32xf32>
    %174 = vector.broadcast %173 : vector<1x32xf32> to vector<8x32xf32>
    %175 = arith.addf %171, %174 : vector<8x32xf32>
    %176 = arith.addf %122, %175 : vector<8x32xf32>
    %c0_84 = arith.constant 0 : index
    %c0_85 = arith.constant 0 : index
    %177 = vector.load %arg17[%c0_84, %c0_85] : memref<8x32xf32, #tpu.memory_space<vmem>>, vector<8x32xf32>
    tpu.vector_store %arg17[%c0_84, %c0_85], %176 {strides = array<i32>} : memref<8x32xf32, #tpu.memory_space<vmem>>, vector<8x32xf32>,
    %c1_i32 = arith.constant 1 : i32
    %178 = arith.cmpi eq, %arg1, %c1_i32 : i32
    %179 = arith.extui %178 : i1 to i32
    %c0_i32_86 = arith.constant 0 : i32
    %180 = arith.cmpi ne, %179, %c0_i32_86 : i32
    scf.if %180 {
      %181 = vector.shape_cast %176 : vector<8x32xf32> to vector<1x8x32xf32>
      %c0_87 = arith.constant 0 : index
      %c0_88 = arith.constant 0 : index
      %c0_89 = arith.constant 0 : index
      %182 = vector.load %arg16[%c0_87, %c0_88, %c0_89] : memref<1x8x32xf32, #tpu.memory_space<vmem>>, vector<1x8x32xf32>
      tpu.vector_store %arg16[%c0_87, %c0_88, %c0_89], %181 {strides = array<i32>} : memref<1x8x32xf32, #tpu.memory_space<vmem>>, vector<1x8x32xf32>,
    } else {
    }
    return
  }
  func.func @transform_0(%arg0: i32, %arg1: i32) -> (i32, i32, i32) {
    %c0_i32 = arith.constant 0 : i32
    %c0_i32_0 = arith.constant 0 : i32
    %c0_i32_1 = arith.constant 0 : i32
    return %arg0, %c0_i32, %c0_i32_0 : i32, i32, i32
  }
  func.func @transform_1(%arg0: i32, %arg1: i32) -> (i32, i32) {
    %c0_i32 = arith.constant 0 : i32
    %c0_i32_0 = arith.constant 0 : i32
    %c0_i32_1 = arith.constant 0 : i32
    return %c0_i32, %c0_i32_0 : i32, i32
  }
  func.func @transform_2(%arg0: i32, %arg1: i32) -> (i32, i32, i32) {
    %c0_i32 = arith.constant 0 : i32
    %c0_i32_0 = arith.constant 0 : i32
    %c0_i32_1 = arith.constant 0 : i32
    return %arg1, %c0_i32, %c0_i32_0 : i32, i32, i32
  }
  func.func @transform_3(%arg0: i32, %arg1: i32) -> (i32, i32, i32) {
    %c0_i32 = arith.constant 0 : i32
    %c0_i32_0 = arith.constant 0 : i32
    %c0_i32_1 = arith.constant 0 : i32
    return %arg1, %c0_i32, %c0_i32_0 : i32, i32, i32
  }
  func.func @transform_4(%arg0: i32, %arg1: i32) -> (i32, i32, i32) {
    %c0_i32 = arith.constant 0 : i32
    %c0_i32_0 = arith.constant 0 : i32
    %c0_i32_1 = arith.constant 0 : i32
    return %arg1, %c0_i32, %c0_i32_0 : i32, i32, i32
  }
  func.func @transform_5(%arg0: i32, %arg1: i32) -> (i32, i32, i32) {
    %c0_i32 = arith.constant 0 : i32
    %c0_i32_0 = arith.constant 0 : i32
    %c0_i32_1 = arith.constant 0 : i32
    return %arg1, %c0_i32, %c0_i32_0 : i32, i32, i32
  }
  func.func @transform_6(%arg0: i32, %arg1: i32) -> (i32, i32, i32) {
    %c0_i32 = arith.constant 0 : i32
    %c0_i32_0 = arith.constant 0 : i32
    %c0_i32_1 = arith.constant 0 : i32
    return %arg1, %c0_i32, %c0_i32_0 : i32, i32, i32
  }
  func.func @transform_7(%arg0: i32, %arg1: i32) -> (i32, i32, i32) {
    %c0_i32 = arith.constant 0 : i32
    %c0_i32_0 = arith.constant 0 : i32
    %c0_i32_1 = arith.constant 0 : i32
    return %arg1, %c0_i32, %c0_i32_0 : i32, i32, i32
  }
  func.func @transform_8(%arg0: i32, %arg1: i32) -> (i32, i32, i32) {
    %c0_i32 = arith.constant 0 : i32
    %c0_i32_0 = arith.constant 0 : i32
    %c0_i32_1 = arith.constant 0 : i32
    return %arg1, %c0_i32, %c0_i32_0 : i32, i32, i32
  }
  func.func @transform_9(%arg0: i32, %arg1: i32) -> (i32, i32, i32) {
    %c0_i32 = arith.constant 0 : i32
    %c0_i32_0 = arith.constant 0 : i32
    %c0_i32_1 = arith.constant 0 : i32
    return %arg1, %c0_i32, %c0_i32_0 : i32, i32, i32
  }
  func.func @transform_10(%arg0: i32, %arg1: i32) -> (i32, i32, i32) {
    %c0_i32 = arith.constant 0 : i32
    %c0_i32_0 = arith.constant 0 : i32
    %c0_i32_1 = arith.constant 0 : i32
    return %arg1, %c0_i32, %c0_i32_0 : i32, i32, i32
  }
  func.func @transform_11(%arg0: i32, %arg1: i32) -> (i32, i32, i32) {
    %c0_i32 = arith.constant 0 : i32
    %c0_i32_0 = arith.constant 0 : i32
    %c0_i32_1 = arith.constant 0 : i32
    return %arg1, %c0_i32, %c0_i32_0 : i32, i32, i32
  }
  func.func @transform_12(%arg0: i32, %arg1: i32) -> (i32, i32, i32) {
    %c0_i32 = arith.constant 0 : i32
    %c0_i32_0 = arith.constant 0 : i32
    %c0_i32_1 = arith.constant 0 : i32
    return %arg1, %c0_i32, %c0_i32_0 : i32, i32, i32
  }
  func.func @transform_13(%arg0: i32, %arg1: i32) -> (i32, i32, i32) {
    %c0_i32 = arith.constant 0 : i32
    %c0_i32_0 = arith.constant 0 : i32
    %c0_i32_1 = arith.constant 0 : i32
    return %arg1, %c0_i32, %c0_i32_0 : i32, i32, i32
  }
  func.func @transform_14(%arg0: i32, %arg1: i32) -> (i32, i32, i32) {
    %c0_i32 = arith.constant 0 : i32
    %c0_i32_0 = arith.constant 0 : i32
    %c0_i32_1 = arith.constant 0 : i32
    return %arg0, %c0_i32, %c0_i32_0 : i32, i32, i32
  }
}

</mosaic_0001>

<bundles_post_ra>
// kernel: tpu_custom_call.1
= control target key start
LH: loop header
LB: loop body
LE: loop exit
PB: predicated region body
PF: predicated region fallthrough
CT: control target
= control target key end

     0   :  { %s2864_s0 = inlined_call_operand.vmem [shape: f32[2,8,32], index: 0, kind: input, shape index: {}]   ;;  %s2865_s1 = inlined_call_operand.vmem [shape: f32[8,8], index: 1, kind: input, shape index: {}]   ;;  %s2866_s2 = inlined_call_operand.vmem [shape: f32[2,1,32], index: 2, kind: input, shape index: {}]   ;;  %s2867_s3 = inlined_call_operand.vmem [shape: f32[2,1,32], index: 3, kind: input, shape index: {}]   ;;  %s2868_s4 = inlined_call_operand.vmem [shape: f32[2,32,96], index: 4, kind: input, shape index: {}]   ;;  %s2869_s5 = inlined_call_operand.vmem [shape: f32[2,1,96], index: 5, kind: input, shape index: {}]   ;;  %s2870_s6 = inlined_call_operand.vmem [shape: f32[2,32,32], index: 6, kind: input, shape index: {}]   ;;  %s2871_s7 = inlined_call_operand.vmem [shape: f32[2,1,32], index: 7, kind: input, shape index: {}]   ;;  %s2872_s8 = inlined_call_operand.vmem [shape: f32[2,1,32], index: 8, kind: input, shape index: {}]   ;;  %s2873_s9 = inlined_call_operand.vmem [shape: f32[2,1,32], index: 9, kind: input, shape index: {}]   ;;  %s2874_s10 = inlined_call_operand.vmem [shape: f32[2,32,128], index: 10, kind: input, shape index: {}]   ;;  %s2875_s11 = inlined_call_operand.vmem [shape: f32[2,1,128], index: 11, kind: input, shape index: {}]   ;;  %s2876_s12 = inlined_call_operand.vmem [shape: f32[2,128,32], index: 12, kind: input, shape index: {}]   ;;  %s2877_s13 = inlined_call_operand.vmem [shape: f32[2,1,32], index: 13, kind: input, shape index: {}]   ;;  %s2878_s14 = inlined_call_operand.hbm [shape: f32[2,8,32], index: 14, kind: output, shape index: {}]  }
   0x1   :  { %2894 = sst [smem:[#allocation20_spill]] %s2864_s0 }
   0x2   :  { %2895 = sst [smem:[#allocation21_spill]] %s2865_s1 }
   0x3   :  { %2896 = sst [smem:[#allocation22_spill]] %s2867_s3 }
   0x4   :  { %2897 = sst [smem:[#allocation23_spill]] %s2868_s4 }
   0x5   :  { %2898 = sst [smem:[#allocation24_spill]] %s2870_s6 }
   0x6   :  { %2899 = sst [smem:[#allocation25_spill]] %s2878_s14 }
   0x7   :  { %19 = vsyncpa [#allocation5], 0 }
   0x8   :  { %21 = vsyncpa [#allocation5 + $0x1], 0  ;;  %s2489_s29 = smov 0   ;;  %s2491_s30 = smov 0  }
   0x9   :  { %s2493_s15 = smov 0   ;;  %s2495_s16 = smov 0  }
   0xa   :  { %s2497_s17 = smov 0   ;;  %s2499_s18 = smov 0  }
   0xb   :  { %s2501_s19 = smov 0   ;;  %s2503_s20 = smov 0  }
   0xc LB: > { %2900 = sst [smem:[#allocation7_spill]] %s2367_s29  ;;  %s1990_s21 = sadd.s32 4294967295, %s2395_s20   ;;  %s2395_s20 = sphi %s2503_s20, %s27_s20   ;;  %s2391_s19 = sphi %s2501_s19, %s2942_s19   ;;  %s2387_s18 = sphi %s2499_s18, %s2941_s18   ;;  %s2383_s17 = sphi %s2497_s17, %s2940_s17   ;;  %s2379_s16 = sphi %s2495_s16, %s2939_s16   ;;  %s2375_s15 = sphi %s2493_s15, %s2938_s15   ;;  %s2371_s30 = sphi %s2491_s30, %s2937_s30   ;;  %s2367_s29 = sphi %s2489_s29, %s2936_s29  }
   0xd   : > { %2901 = sst [smem:[#allocation8_spill]] %s2371_s30  ;;  %s1991_s22 = sadd.s32 4294967294, %s2395_s20  }
   0xe   : > { %2902 = sst [smem:[#allocation9_spill]] %s2375_s15  ;;  %s36_s23 = sadd.s32 1, %s2387_s18 }
   0xf   : > { %2903 = sst [smem:[#allocation10_spill]] %s2379_s16  ;;  %p37_p0 = scmp.ge.s32.totalorder %s36_s23, 2 }
  0x10   : > { %2904 = sst [smem:[#allocation11_spill]] %s2383_s17  ;;  %s39_s24 = sadd.s32 1, %s2391_s19 }
  0x11   : > { %2905 = sst [smem:[#allocation12_spill]] %s2387_s18  ;;  %p415_p1 = scmp.ne.s32.totalorder %s2375_s15, %s2371_s30 }
  0x12   : > { %2906 = sst [smem:[#allocation13_spill]] %s2391_s19  ;;  %p416_p2 = scmp.eq.s32.totalorder %s1990_s21, 3 }
  0x13   : > { %2907 = sst [smem:[#allocation14_spill]] %s2395_s20  ;;  %s2944_s23 = smov (%p37_p0, %s36_s23), 0 }
  0x14   : > { %2908 = sst [smem:[#allocation15_spill]] %s2944_s23  ;;  %s2946_s24 = smov (!%p37_p0, %s39_s24), %s2391_s19 }
  0x15   : > { %p2538_p3 = por %p416_p2, %p415_p1  ;;  %p421_p4 = scmp.ne.s32.totalorder %s2371_s30, %s2367_s29 }
  0x16   : > { %p41_p5 = scmp.ge.s32.totalorder %s2946_s24, 2  ;;  %p422_p6 = scmp.eq.s32.totalorder %s1991_s22, 3 }
  0x17   : > { %s2909_s25 = scalar_select %p2538_p3, 1, 0 }
  0x18   : > { %p1994_p7 = scmp.ge.s32.totalorder %s2395_s20, 1  ;;  %p530_p8 = scmp.lt.s32.totalorder %s2395_s20, 5 }
  0x19   : > { %2910 = sst [smem:[#allocation16_spill]] %s2909_s25  ;;  %s2948_s24 = smov (%p41_p5, %s2946_s24), 0 }
  0x1a   : > { %2911 = sst [smem:[#allocation17_spill]] %s2948_s24  ;;  %p2548_p9 = por %p422_p6, %p421_p4 }
  0x1b   : > { %p531_p10 = pnand %p1994_p7, %p530_p8  ;;  %s402_s27 = ssub.s32 %s2391_s19, %s2948_s24 }
  0x1c   : > { %s2912_s26 = scalar_select %p2548_p9, 1, 0 }
  0x1d   : > { %s405_s28 = sadd.s32 1, %s2375_s15  ;;  %p403_p11 = scmp.eq.s32.totalorder %s402_s27, 0 }
  0x1e   : > { %2913 = sst [smem:[#allocation18_spill]] %s2912_s26  ;;  %534 = sbr.rel (%p531_p10) target bundleno = 2478 (0x9ae), region = 76 }
  0x1f   : > { %s2556_s21 = scalar_select %p403_p11, %s2375_s15, %s405_s28  }
  0x20   : > { %s2882_s22 = sand.u32 (!%p531_p10), 1, %s2371_s30   ;;  %p619_p12 = scmp.lt.s32.totalorder (!%p531_p10), %s2383_s17, 1 }
  0x21   : > { %2914 = sst [smem:[#allocation19_spill]] %s2556_s21  ;;  %s2562_s23 = sshll.u32 (!%p531_p10), %s2882_s22, 3 }
  0x22   : > { %p623_p13 = scmp.lt.s32.totalorder (!%p531_p10), %s2379_s16, 1  ;;  %s2915_s0 = sld [smem:[#allocation20_spill]] (!%p531_p10) }
  0x23   : > { %s620_s18 = scalar_select %p619_p12, %s2383_s17, 1 }
  0x24   : > { %s2567_s26 = scalar_select %p623_p13, %s2379_s16, 1 }
  0x25   : > { %s1996_s27 = sshll.u32 %s620_s18, 3  ;;  %s2917_s4 = sld [smem:[#allocation23_spill]] }
  0x26   : > { %s2034_s25 = sshll.u32 %s2567_s26, 5  ;;  %s2918_s6 = sld [smem:[#allocation24_spill]] }
  0x27   : > { %s2610_s18 = scalar_lea.vmem %s2874_s10, %s2034_s25  ;;  %s658_s24 = scalar_lea.vmem %s2875_s11, %s2567_s26 }
  0x28   : > { %s622_s22 = scalar_lea.vmem %s2915_s0, %s1996_s27  ;;  %s666_s29 = scalar_lea.vmem %s2877_s13, %s2567_s26 }
  0x29   : > { %s618_s30 = scalar_lea.vmem [#allocation4], %s2562_s23  ;;  %s2919_s17 = sld [smem:[#allocation10_spill]] }
  0x2b   : > { %s2584_s1 = scalar_lea.vmem %s2917_s4, %s2034_s25  ;;  %s650_s4 = scalar_lea.vmem %s2873_s9, %s2567_s26 }
  0x2c   : > { %s2593_s0 = scalar_lea.vmem %s2918_s6, %s2034_s25  ;;  %s2037_s6 = sshll.u32 %s2567_s26, 7 }
  0x2d   : > { %s2624_s15 = scalar_lea.vmem %s2876_s12, %s2037_s6 }
  0x2f   : > { %p2005_p0 = scmp.ne.s32.totalorder %s2919_s17, 0 }
  0x31   : > { %670 = sbr.rel (%p2005_p0) target bundleno = 56 (0x38), region = 80 }
  0x36   : > { %v671_v0 = vld [vmem:[%s622_s22] sm:$0xff]  ;;  %vm672_vm0 = vcmask 261120  }
  0x37   : > { %673 = vst.msk [vmem:[#allocation2] sm:$0xff] %vm672_vm0, %v671_v0 }
  0x38 PF: > { %vm678_vm1 = vcmask 261120   ;;  %v710_v8 = vld [vmem:[%s2584_s1 + $0x18] sm:$0xff]  ;;  %v2397_v9 = vmov 0.0   ;;  %v709_v10 = vld [vmem:[%s2584_s1 + $0x10] sm:$0xff]  ;;  %vm2398_vm2 = vmmov 0   ;;  %v708_v11 = vld [vmem:[%s2584_s1 + $0x8] sm:$0xff]  ;;  %s2920_s25 = scalar_lea.vmem %s2866_s2, %s2567_s26  ;;  %s2923_s21 = scalar_lea.vmem %s2869_s5, %s2567_s26 }
  0x39   : > { %2086 = vmatprep.subr.mxu1 %v2397_v9  ;;  %2094 = vmatprep.mubr.msk.f32.mxu1 %vm2398_vm2, %v2397_v9  ;;  %v707_v12 = vld [vmem:[%s2584_s1] sm:$0xff]  ;;  %s2921_s16 = sld [smem:[#allocation22_spill]]  ;;  %s2399_s14 = smov 120   ;;  %vm794_vm3 = vcmask 64512   ;;  %vm1130_vm4 = vcmask 130112   ;;  %vm1303_vm5 = vcmask 195712  }
  0x3a   : > { %2087 = vmatpush3.msra.mxu1 %v710_v8  ;;  %2107 = vmatprep.subr.mxu0 %v2397_v9  ;;  %v2006_v17 = vld [vmem:[%s2920_s25] ss:$0 sm:$0xff]  ;;  %s2400_s20 = smov 96   ;;  %s2401_s17 = smov 88   ;;  %vm1476_vm6 = vcmask 261312  }
  0x3b   : > { %2088 = vmatprep.subr.mxu1 %v2397_v9  ;;  %2109 = vmatprep.mubr.msk.f32.mxu0 %vm2398_vm2, %v2397_v9  ;;  %v2008_v22 = vld [vmem:[%s2923_s21] ss:$0 sm:$0xff]  ;;  %s2402_s3 = smov 80   ;;  %s2403_s6 = smov 112  }
  0x3c   : > { %2089 = vmatpush3.msra.mxu1 %v709_v10  ;;  %s2404_s25 = smov 72   ;;  %s2405_s22 = smov 104  }
  0x3d   : > { %2090 = vmatprep.subr.mxu1 %v2397_v9  ;;  %s2406_s27 = smov 64   ;;  %s2407_s19 = smov 48  }
  0x3e   : > { %v2628_v1 = vld [vmem:[#allocation2] sm:$0xff]  ;;  %2091 = vmatpush3.msra.mxu1 %v708_v11  ;;  %s2408_s21 = smov 40  }
  0x3f   : > { %v679_v2 = vsel %vm678_vm1, %v2628_v1, 0.0  ;;  %2092 = vmatprep.subr.mxu1 %v2397_v9  ;;  %s2922_s28 = scalar_lea.vmem %s2921_s16, %s2567_s26  ;;  %s2926_s16 = scalar_lea.vmem %s2872_s8, %s2567_s26 }
  0x40   : > { %680 = vadd.xlane.f32.xlu0 %v679_v2  ;;  %2093 = vmatpush3.msra.mxu1 %v707_v12  ;;  %v2007_v19 = vld [vmem:[%s2922_s28] ss:$0 sm:$0xff]  ;;  %s2924_s28 = sld [smem:[#allocation21_spill]] }
  0x41   : > { %2097 = vmatprep.subr.mxu1 %v2397_v9 }
  0x46   : > { %v675_v34 = vld [vmem:[%s2924_s28] sm:$0xff] }
  0xc9   : > { %v681_v3 = vpop.xlane.xlu0 %680 }
  0xca   : > { %v683_v4 = vmul.f32 0.03125, %v681_v3 }
  0xcc   : > { %v684_v5 = vsub.f32 %v2628_v1, %v683_v4 }
  0xce   : > { %v685_v6 = vmul.f32 %v684_v5, %v684_v5 }
  0xd0   : > { %v686_v7 = vsel %vm678_vm1, %v685_v6, 0.0 }
  0xd1   : > { %687 = vadd.xlane.f32.xlu0 %v686_v7 }
 0x15a   : > { %v688_v13 = vpop.xlane.xlu0 %687 }
 0x15b   : > { %v689_v14 = vmul.f32 0.03125, %v688_v13 }
 0x15d   : > { %v690_v15 = vadd.f32 1e-06, %v689_v14 }
 0x15f   : > { %2281 = vrsqrt.f32 %v690_v15 }
 0x16c   : > { %v2282_v16 = vpop.eup %2281 }
 0x16d   : > { %v692_v18 = vmul.f32 %v2282_v16, %v684_v5 }
 0x16f   : > { %v699_v20 = vmul.f32 %v2006_v17, %v692_v18 }
 0x171   : > { %v706_v21 = vadd.f32 %v2007_v19, %v699_v20 }
 0x173   : > { %2095 = vmatmul.mubr.msk.f32.vlgmr.msra.gmra.mxu1 %vm678_vm1, %v706_v21 }
 0x174   : > { %2099 = vmatprep.mubr.msk.f32.mxu1 %vm2398_vm2, %v2397_v9 }
 0x233   : > { %v787_v23 = vpop.f32.mrf.mxu1 }
 0x234   : > { %v2666_v24 = vadd.f32 %v2008_v22, %v787_v23 }
 0x235   : > { %v2096_v25 = vpop.f32.mrf.mxu1 }
 0x236   : > { %959 = vrot.lane.b32.xlu0 %v2666_v24, %s2399_s14  ;;  %792 = vrot.lane.b32.xlu1 %v2666_v24, %s2400_s20  ;;  %s2409_s14 = smov 56   ;;  %s2410_s20 = smov 8  }
 0x23a   : > { %961 = vrot.lane.b32.xlu1 %v2666_v24, %s2401_s17  ;;  %s2411_s17 = smov 16  }
 0x23e   : > { %1134 = vrot.lane.b32.xlu1 %v2666_v24, %s2402_s3  ;;  %s2412_s3 = smov 24  }
 0x242   : > { %1132 = vrot.lane.b32.xlu1 %v2666_v24, %s2403_s6 }
 0x246   : > { %1307 = vrot.lane.b32.xlu1 %v2666_v24, %s2404_s25  ;;  %s2925_s25 = scalar_lea.vmem %s2871_s7, %s2567_s26 }
 0x24a   : > { %1305 = vrot.lane.b32.xlu1 %v2666_v24, %s2405_s22 }
 0x2a8   : > { %v793_v26 = vpop.permute.xlu1 %792  ;;  %v960_v28 = vpop.permute.xlu0 %959 }
 0x2a9   : > { %2098 = vmatpush3.xpose.msk.msra.mxu1 %vm794_vm3, %v793_v26 }
 0x2aa   : > { %2102 = vmatprep.subr.mxu1 %v2397_v9 }
 0x2ac   : > { %2100 = vmatmul.mubr.msk.f32.vlgmr.msra.gmra.mxu1 %vm794_vm3, %v2666_v24  ;;  %v962_v27 = vpop.permute.xlu1 %961 }
 0x2ad   : > { %2108 = vmatpush3.xpose.msk.msra.mxu0 %vm794_vm3, %v962_v27  ;;  %2104 = vmatprep.mubr.msk.f32.mxu1 %vm2398_vm2, %v2397_v9 }
 0x2ae   : > { %2117 = vmatprep.subr.mxu0 %v2397_v9 }
 0x2b0   : > { %2110 = vmatmul.mubr.msk.f32.vlgmr.msra.gmra.mxu0 %vm794_vm3, %v960_v28  ;;  %v1135_v29 = vpop.permute.xlu1 %1134 }
 0x2b1   : > { %2118 = vmatpush3.xpose.msk.msra.mxu0 %vm794_vm3, %v1135_v29  ;;  %2119 = vmatprep.mubr.msk.f32.mxu0 %vm2398_vm2, %v2397_v9 }
 0x2b2   : > { %2127 = vmatprep.subr.mxu0 %v2397_v9 }
 0x2b4   : > { %v1133_v30 = vpop.permute.xlu1 %1132 }
 0x2b5   : > { %2120 = vmatmul.mubr.msk.f32.vlgmr.msra.gmra.mxu0 %vm794_vm3, %v1133_v30  ;;  %v1482_v30 = vld [vmem:[%s2593_s0 + $0x18] sm:$0xff] }
 0x2b6   : > { %2129 = vmatprep.mubr.msk.f32.mxu0 %vm2398_vm2, %v2397_v9 }
 0x2b8   : > { %v1308_v31 = vpop.permute.xlu1 %1307 }
 0x2b9   : > { %2128 = vmatpush3.xpose.msk.msra.mxu0 %vm794_vm3, %v1308_v31  ;;  %v1481_v31 = vld [vmem:[%s2593_s0 + $0x10] sm:$0xff] }
 0x2ba   : > { %2159 = vmatprep.subr.mxu0 %v2397_v9 }
 0x2bc   : > { %v1306_v32 = vpop.permute.xlu1 %1305 }
 0x2bd   : > { %2130 = vmatmul.mubr.msk.f32.vlgmr.msra.gmra.mxu0 %vm794_vm3, %v1306_v32 }
 0x2be   : > { %2191 = vmatprep.mubr.msk.f32.mxu0 %vm2398_vm2, %v2397_v9 }
 0x36c   : > { %v865_v33 = vpop.f32.mrf.mxu1 }
 0x36d   : > { %v869_v35 = vmul.f32 0.35355338, %v865_v33  ;;  %v1480_v33 = vld [vmem:[%s2593_s0 + $0x8] sm:$0xff] }
 0x36e   : > { %v2101_v36 = vpop.f32.mrf.mxu1 }
 0x36f   : > { %v870_v37 = vadd.f32 %v869_v35, %v675_v34  ;;  %v1479_v35 = vld [vmem:[%s2593_s0] sm:$0xff] }
 0x370   : > { %v1033_v38 = vpop.f32.mrf.mxu0 }
 0x371   : > { %v1037_v39 = vmul.f32 0.35355338, %v1033_v38  ;;  %v871_v40 = vsel %vm794_vm3, %v870_v37, -inf }
 0x372   : > { %v2111_v41 = vpop.f32.mrf.mxu0  ;;  %872 = vmax.xlane.f32.xlu1 %v871_v40 }
 0x373   : > { %v1038_v42 = vadd.f32 %v1037_v39, %v675_v34 }
 0x375   : > { %v1206_v43 = vpop.f32.mrf.mxu0  ;;  %v1039_v44 = vsel %vm794_vm3, %v1038_v42, -inf }
 0x376   : > { %v1210_v45 = vmul.f32 0.35355338, %v1206_v43  ;;  %1040 = vmax.xlane.f32.xlu0 %v1039_v44  ;;  %v2022_v44 = vld [vmem:[%s2925_s25] ss:$0 sm:$0xff] }
 0x377   : > { %v2121_v46 = vpop.f32.mrf.mxu0 }
 0x378   : > { %v1211_v47 = vadd.f32 %v1210_v45, %v675_v34 }
 0x37a   : > { %v1212_v48 = vsel %vm794_vm3, %v1211_v47, -inf }
 0x37b   : > { %1213 = vmax.xlane.f32.xlu1 %v1212_v48 }
 0x37d   : > { %v1379_v49 = vpop.f32.mrf.mxu0 }
 0x37e   : > { %v1383_v50 = vmul.f32 0.35355338, %v1379_v49 }
 0x37f   : > { %v2131_v51 = vpop.f32.mrf.mxu0 }
 0x380   : > { %v1384_v52 = vadd.f32 %v1383_v50, %v675_v34 }
 0x382   : > { %v1385_v53 = vsel %vm794_vm3, %v1384_v52, -inf }
 0x383   : > { %1386 = vmax.xlane.f32.xlu0 %v1385_v53 }
 0x38c   : > { %882 = vrot.lane.b32.xlu1 %v2666_v24, %s2406_s27 }
 0x3fb   : > { %v873_v54 = vpop.xlane.xlu1 %872 }
 0x3fc   : > { %v874_v55 = vsub.f32 %v870_v37, %v873_v54 }
 0x3fe   : > { %v875_v56 = vmul.f32 1.442695, %v874_v55  ;;  %v1596_v55 = vld [vmem:[%s2610_s18 + $0x18] sm:$0xff] }
 0x3ff   : > { %v1041_v57 = vpop.xlane.xlu0 %1040 }
 0x400   : > { %2283 = vpow2.f32 %v875_v56  ;;  %v1042_v58 = vsub.f32 %v1038_v42, %v1041_v57  ;;  %v1595_v56 = vld [vmem:[%s2610_s18 + $0x10] sm:$0xff]  ;;  %v1593_v57 = vld [vmem:[%s2610_s18] sm:$0xff] }
 0x402   : > { %v1043_v59 = vmul.f32 1.442695, %v1042_v58 }
 0x404   : > { %2285 = vpow2.f32 %v1043_v59  ;;  %v1214_v60 = vpop.xlane.xlu1 %1213 }
 0x405   : > { %v1215_v61 = vsub.f32 %v1211_v47, %v1214_v60 }
 0x407   : > { %v1216_v62 = vmul.f32 1.442695, %v1215_v61 }
 0x408   : > { %v883_v63 = vpop.permute.xlu1 %882 }
 0x409   : > { %2287 = vpow2.f32 %v1216_v62  ;;  %2103 = vmatpush3.msra.mxu1 %v883_v63  ;;  %v2024_v62 = vld [vmem:[%s2926_s16] ss:$0 sm:$0xff] }
 0x40a   : > { %2112 = vmatprep.subr.mxu1 %v2397_v9 }
 0x40c   : > { %v1387_v0 = vpop.xlane.xlu0 %1386 }
 0x40d   : > { %v2284_v2 = vpop.eup %2283  ;;  %v1388_v3 = vsub.f32 %v1384_v52, %v1387_v0  ;;  %v2025_v0 = vld [vmem:[%s650_s4] ss:$0 sm:$0xff] }
 0x40e   : > { %v877_v4 = vsel %vm794_vm3, %v2284_v2, 0.0 }
 0x40f   : > { %v1389_v5 = vmul.f32 1.442695, %v1388_v3  ;;  %878 = vadd.xlane.f32.xlu1 %v877_v4  ;;  %v1701_v4 = vld [vmem:[%s2624_s15 + $0x78] sm:$0xff] }
 0x410   : > { %2160 = vmatpush3.msra.mxu0 %v1701_v4 }
 0x411   : > { %v2286_v6 = vpop.eup %2285  ;;  %2289 = vpow2.f32 %v1389_v5  ;;  %2161 = vmatprep.subr.mxu0 %v2397_v9  ;;  %v1700_v5 = vld [vmem:[%s2624_s15 + $0x70] sm:$0xff] }
 0x412   : > { %v1045_v7 = vsel %vm794_vm3, %v2286_v6, 0.0  ;;  %2162 = vmatpush3.msra.mxu0 %v1700_v5 }
 0x413   : > { %1046 = vadd.xlane.f32.xlu0 %v1045_v7  ;;  %2163 = vmatprep.subr.mxu0 %v2397_v9  ;;  %v1698_v7 = vld [vmem:[%s2624_s15 + $0x60] sm:$0xff] }
 0x416   : > { %v2288_v8 = vpop.eup %2287 }
 0x417   : > { %v1218_v10 = vsel %vm794_vm3, %v2288_v8, 0.0 }
 0x418   : > { %1219 = vadd.xlane.f32.xlu1 %v1218_v10  ;;  %v1696_v10 = vld [vmem:[%s2624_s15 + $0x50] sm:$0xff] }
 0x41e   : > { %v2290_v11 = vpop.eup %2289 }
 0x41f   : > { %v1391_v12 = vsel %vm794_vm3, %v2290_v11, 0.0 }
 0x420   : > { %1392 = vadd.xlane.f32.xlu0 %v1391_v12  ;;  %v1694_v12 = vld [vmem:[%s2624_s15 + $0x40] sm:$0xff] }
 0x429   : > { %1223 = vrot.lane.b32.xlu1 %v2666_v24, %s2407_s19 }
 0x42d   : > { %1396 = vrot.lane.b32.xlu1 %v2666_v24, %s2408_s21 }
 0x436   : > { %1050 = vrot.lane.b32.xlu0 %v2666_v24, %s2409_s14 }
 0x498   : > { %v879_v13 = vpop.xlane.xlu1 %878 }
 0x499   : > { %2291 = vrcp.f32 %v879_v13  ;;  %v1693_v13 = vld [vmem:[%s2624_s15 + $0x38] sm:$0xff] }
 0x49c   : > { %v1047_v14 = vpop.xlane.xlu0 %1046 }
 0x49d   : > { %2293 = vrcp.f32 %v1047_v14  ;;  %v1692_v14 = vld [vmem:[%s2624_s15 + $0x30] sm:$0xff] }
 0x4a1   : > { %v1220_v15 = vpop.xlane.xlu1 %1219 }
 0x4a2   : > { %2295 = vrcp.f32 %v1220_v15  ;;  %v1691_v15 = vld [vmem:[%s2624_s15 + $0x28] sm:$0xff] }
 0x4a5   : > { %v1224_v20 = vpop.permute.xlu1 %1223 }
 0x4a6   : > { %v2292_v16 = vpop.eup %2291 }
 0x4a7   : > { %v881_v17 = vmul.f32 %v2292_v16, %v2284_v2  ;;  %v1690_v16 = vld [vmem:[%s2624_s15 + $0x20] sm:$0xff] }
 0x4a9   : > { %v1393_v18 = vpop.xlane.xlu0 %1392  ;;  %2105 = vmatmul.mubr.msk.f32.vlgmr.msra.gmra.mxu1 %vm794_vm3, %v881_v17  ;;  %v1397_v25 = vpop.permute.xlu1 %1396  ;;  %v1689_v17 = vld [vmem:[%s2624_s15 + $0x18] sm:$0xff] }
 0x4aa   : > { %v2294_v19 = vpop.eup %2293  ;;  %2297 = vrcp.f32 %v1393_v18  ;;  %2114 = vmatprep.mubr.msk.f32.mxu1 %vm2398_vm2, %v2397_v9  ;;  %v1688_v18 = vld [vmem:[%s2624_s15 + $0x10] sm:$0xff] }
 0x4ab   : > { %v1049_v22 = vmul.f32 %v2294_v19, %v2286_v6  ;;  %v1699_v6 = vld [vmem:[%s2624_s15 + $0x68] sm:$0xff] }
 0x4ac   : > { %2164 = vmatpush3.msra.mxu0 %v1699_v6  ;;  %v1687_v19 = vld [vmem:[%s2624_s15 + $0x8] sm:$0xff] }
 0x4ad   : > { %v1051_v21 = vpop.permute.xlu0 %1050  ;;  %2165 = vmatprep.subr.mxu0 %v2397_v9 }
 0x4ae   : > { %2113 = vmatpush3.msra.mxu1 %v1051_v21  ;;  %2166 = vmatpush3.msra.mxu0 %v1698_v7  ;;  %v2026_v21 = vld [vmem:[%s658_s24] ss:$0 sm:$0xff]  ;;  %s2927_s24 = sld [smem:[#allocation10_spill]] }
 0x4af   : > { %v2296_v23 = vpop.eup %2295  ;;  %2115 = vmatmul.mubr.msk.f32.vlgmr.msra.gmra.mxu1 %vm794_vm3, %v1049_v22  ;;  %2122 = vmatprep.subr.mxu1 %v2397_v9 }
 0x4b0   : > { %2123 = vmatpush3.msra.mxu1 %v1224_v20  ;;  %2124 = vmatprep.mubr.msk.f32.mxu1 %vm2398_vm2, %v2397_v9  ;;  %v1222_v24 = vmul.f32 %v2296_v23, %v2288_v8  ;;  %v1697_v8 = vld [vmem:[%s2624_s15 + $0x58] sm:$0xff]  ;;  %v1686_v20 = vld [vmem:[%s2624_s15] sm:$0xff] }
 0x4b1   : > { %2132 = vmatprep.subr.mxu1 %v2397_v9  ;;  %2167 = vmatprep.subr.mxu0 %v2397_v9 }
 0x4b2   : > { %2168 = vmatpush3.msra.mxu0 %v1697_v8 }
 0x4b3   : > { %2125 = vmatmul.mubr.msk.f32.vlgmr.msra.gmra.mxu1 %vm794_vm3, %v1222_v24  ;;  %2169 = vmatprep.subr.mxu0 %v2397_v9 }
 0x4b4   : > { %2133 = vmatpush3.msra.mxu1 %v1397_v25  ;;  %2134 = vmatprep.mubr.msk.f32.mxu1 %vm2398_vm2, %v2397_v9  ;;  %p2029_p1 = scmp.ne.s32.totalorder %s2927_s24, 1 }
 0x4b5   : > { %2137 = vmatprep.subr.mxu1 %v2397_v9  ;;  %2170 = vmatpush3.msra.mxu0 %v1696_v10 }
 0x4b6   : > { %2171 = vmatprep.subr.mxu0 %v2397_v9 }
 0x4b7   : > { %v2298_v26 = vpop.eup %2297 }
 0x4b8   : > { %v1395_v27 = vmul.f32 %v2298_v26, %v2290_v11  ;;  %v1695_v11 = vld [vmem:[%s2624_s15 + $0x48] sm:$0xff] }
 0x4b9   : > { %2172 = vmatpush3.msra.mxu0 %v1695_v11 }
 0x4ba   : > { %2135 = vmatmul.mubr.msk.f32.vlgmr.msra.gmra.mxu1 %vm794_vm3, %v1395_v27  ;;  %2173 = vmatprep.subr.mxu0 %v2397_v9 }
 0x4bb   : > { %2145 = vmatprep.mubr.msk.f32.mxu1 %vm2398_vm2, %v2397_v9  ;;  %2138 = vmatpush3.msra.mxu1 %v1482_v30 }
 0x4bc   : > { %2139 = vmatprep.subr.mxu1 %v2397_v9  ;;  %2174 = vmatpush3.msra.mxu0 %v1694_v12 }
 0x4bd   : > { %2140 = vmatpush3.msra.mxu1 %v1481_v31  ;;  %2175 = vmatprep.subr.mxu0 %v2397_v9 }
 0x4be   : > { %2141 = vmatprep.subr.mxu1 %v2397_v9  ;;  %2176 = vmatpush3.msra.mxu0 %v1693_v13 }
 0x4bf   : > { %2142 = vmatpush3.msra.mxu1 %v1480_v33  ;;  %2177 = vmatprep.subr.mxu0 %v2397_v9  ;;  %v2028_v33 = vld [vmem:[%s666_s29] ss:$0 sm:$0xff] }
 0x4c0   : > { %2143 = vmatprep.subr.mxu1 %v2397_v9  ;;  %2178 = vmatpush3.msra.mxu0 %v1692_v14 }
 0x4c1   : > { %2144 = vmatpush3.msra.mxu1 %v1479_v35  ;;  %2179 = vmatprep.subr.mxu0 %v2397_v9 }
 0x4c2   : > { %2148 = vmatprep.subr.mxu1 %v2397_v9  ;;  %2180 = vmatpush3.msra.mxu0 %v1691_v15 }
 0x4c3   : > { %2181 = vmatprep.subr.mxu0 %v2397_v9 }
 0x4c4   : > { %2182 = vmatpush3.msra.mxu0 %v1690_v16 }
 0x4c5   : > { %2183 = vmatprep.subr.mxu0 %v2397_v9 }
 0x4c6   : > { %2184 = vmatpush3.msra.mxu0 %v1689_v17 }
 0x4c7   : > { %2185 = vmatprep.subr.mxu0 %v2397_v9 }
 0x4c8   : > { %2186 = vmatpush3.msra.mxu0 %v1688_v18 }
 0x4c9   : > { %2187 = vmatprep.subr.mxu0 %v2397_v9 }
 0x4ca   : > { %2188 = vmatpush3.msra.mxu0 %v1687_v19 }
 0x4cb   : > { %2189 = vmatprep.subr.mxu0 %v2397_v9 }
 0x4cc   : > { %2190 = vmatpush3.msra.mxu0 %v1686_v20 }
 0x569   : > { %v954_v28 = vpop.f32.mrf.mxu1 }
 0x56a   : > { %958 = vst.msk [vmem:[#allocation3] sm:$0xff] %vm794_vm3, %v954_v28 }
 0x56b   : > { %v2106_v29 = vpop.f32.mrf.mxu1 }
 0x56f   : > { %v1122_v32 = vpop.f32.mrf.mxu1 }
 0x570   : > { %1127 = vrot.lane.b32.xlu0 %v1122_v32, %s2410_s20 }
 0x571   : > { %v2116_v34 = vpop.f32.mrf.mxu1 }
 0x573   : > { %v1295_v36 = vpop.f32.mrf.mxu1 }
 0x574   : > { %1300 = vrot.lane.b32.xlu1 %v1295_v36, %s2411_s17 }
 0x575   : > { %v2126_v37 = vpop.f32.mrf.mxu1 }
 0x57a   : > { %v1468_v38 = vpop.f32.mrf.mxu1 }
 0x57b   : > { %1473 = vrot.lane.b32.xlu0 %v1468_v38, %s2412_s3 }
 0x57c   : > { %v2136_v39 = vpop.f32.mrf.mxu1 }
 0x5e2   : > { %v1128_v40 = vpop.permute.xlu0 %1127 }
 0x5e3   : > { %1131 = vst.msk [vmem:[#allocation3] sm:$0xff] %vm1130_vm4, %v1128_v40 }
 0x5e6   : > { %v1301_v41 = vpop.permute.xlu1 %1300 }
 0x5e7   : > { %1304 = vst.msk [vmem:[#allocation3] sm:$0xff] %vm1303_vm5, %v1301_v41 }
 0x5ed   : > { %v1474_v42 = vpop.permute.xlu0 %1473 }
 0x5ee   : > { %1477 = vst.msk [vmem:[#allocation3] sm:$0xff] %vm1476_vm6, %v1474_v42 }
 0x5f5   : > { %v1478_v43 = vld [vmem:[#allocation3] sm:$0xff] }
 0x5f6   : > { %2146 = vmatmul.mubr.msk.f32.vlgmr.msra.gmra.mxu1 %vm678_vm1, %v1478_v43 }
 0x5f7   : > { %2156 = vmatprep.mubr.msk.f32.mxu1 %vm2398_vm2, %v2397_v9  ;;  %2149 = vmatpush3.msra.mxu1 %v1596_v55 }
 0x5f8   : > { %2150 = vmatprep.subr.mxu1 %v2397_v9 }
 0x5f9   : > { %2151 = vmatpush3.msra.mxu1 %v1595_v56 }
 0x5fa   : > { %2152 = vmatprep.subr.mxu1 %v2397_v9 }
 0x6b6   : > { %v1559_v45 = vpop.f32.mrf.mxu1 }
 0x6b7   : > { %v1560_v46 = vadd.f32 %v2022_v44, %v1559_v45 }
 0x6b8   : > { %v2147_v47 = vpop.f32.mrf.mxu1 }
 0x6b9   : > { %v2745_v48 = vadd.f32 %v1560_v46, %v2628_v1  ;;  %v1594_v1 = vld [vmem:[%s2610_s18 + $0x8] sm:$0xff] }
 0x6ba   : > { %2153 = vmatpush3.msra.mxu1 %v1594_v1 }
 0x6bb   : > { %v1566_v49 = vsel %vm678_vm1, %v2745_v48, 0.0  ;;  %2154 = vmatprep.subr.mxu1 %v2397_v9 }
 0x6bc   : > { %1567 = vadd.xlane.f32.xlu1 %v1566_v49  ;;  %2155 = vmatpush3.msra.mxu1 %v1593_v57 }
 0x745   : > { %v1568_v50 = vpop.xlane.xlu1 %1567 }
 0x746   : > { %v1569_v51 = vmul.f32 0.03125, %v1568_v50 }
 0x748   : > { %v1570_v52 = vsub.f32 %v2745_v48, %v1569_v51 }
 0x74a   : > { %v1571_v53 = vmul.f32 %v1570_v52, %v1570_v52 }
 0x74c   : > { %v1572_v54 = vsel %vm678_vm1, %v1571_v53, 0.0 }
 0x74d   : > { %1573 = vadd.xlane.f32.xlu0 %v1572_v54 }
 0x7d6   : > { %v1574_v58 = vpop.xlane.xlu0 %1573 }
 0x7d7   : > { %v1575_v59 = vmul.f32 0.03125, %v1574_v58 }
 0x7d9   : > { %v1576_v60 = vadd.f32 1e-06, %v1575_v59 }
 0x7db   : > { %2299 = vrsqrt.f32 %v1576_v60 }
 0x7e8   : > { %v2300_v61 = vpop.eup %2299 }
 0x7e9   : > { %v1578_v63 = vmul.f32 %v2300_v61, %v1570_v52 }
 0x7eb   : > { %v1585_v2 = vmul.f32 %v2024_v62, %v1578_v63 }
 0x7ed   : > { %v1592_v3 = vadd.f32 %v2025_v0, %v1585_v2 }
 0x7ef   : > { %2157 = vmatmul.mubr.msk.f32.vlgmr.msra.gmra.mxu1 %vm678_vm1, %v1592_v3 }
 0x8af   : > { %v1673_v22 = vpop.f32.mrf.mxu1 }
 0x8b0   : > { %v1674_v23 = vadd.f32 %v2026_v21, %v1673_v22 }
 0x8b1   : > { %v2158_v24 = vpop.f32.mrf.mxu1 }
 0x8b2   : > { %v1678_v25 = vmul.f32 0.044715, %v1674_v23  ;;  %v1677_v31 = vmul.f32 0.5, %v1674_v23 }
 0x8b4   : > { %v1679_v26 = vmul.f32 %v1678_v25, %v1674_v23 }
 0x8b6   : > { %v1680_v27 = vmul.f32 %v1679_v26, %v1674_v23 }
 0x8b8   : > { %v1681_v28 = vadd.f32 %v1680_v27, %v1674_v23 }
 0x8ba   : > { %v1682_v29 = vmul.f32 0.7978846, %v1681_v28 }
 0x8bc   : > { %2301 = vtanh.f32 %v1682_v29 }
 0x8c9   : > { %v2302_v30 = vpop.eup %2301 }
 0x8ca   : > { %v1684_v32 = vadd.f32 1.0, %v2302_v30 }
 0x8cc   : > { %v1685_v9 = vmul.f32 %v1684_v32, %v1677_v31 }
 0x8ce   : > { %2192 = vmatmul.mubr.f32.vlgmr.msra.gmra.mxu0 %v1685_v9 }
 0x98e   : > { %v1775_v34 = vpop.f32.mrf.mxu0 }
 0x98f   : > { %v1776_v35 = vadd.f32 %v2028_v33, %v1775_v34  ;;  %1784 = sbr.rel (%p2029_p1) target bundleno = 2453 (0x995), region = 84 }
 0x990   : > { %v2193_v36 = vpop.f32.mrf.mxu0 }
 0x991   : > { %v1779_v37 = vadd.f32 %v1776_v35, %v2745_v48 }
 0x993   : > { %1780 = vst.msk [vmem:[#allocation2] sm:$0xff] %vm678_vm1, %v1779_v37 }
 0x994   : > { %1785 = vst.msk [vmem:[%s618_s30] sm:$0xff] %vm678_vm1, %v1779_v37 }
 0x995 PF: > { %s2928_s21 = sld [smem:[#allocation11_spill]]  ;;  %s1800_s6 = sshll.u32 %s618_s30, 4  ;;  %s1801_s6 = int_to_ptr.vmem [resolvable:$true] %s1800_s6 }
 0x996   : > { %s2929_s14 = sld [smem:[#allocation8_spill]]  ;;  %s2303_s1 = scalar_lea.vmem %s1801_s6, 128 }
 0x997   : > { %s2931_s3 = sld [smem:[#allocation25_spill]]  ;;  %p2304_p2 = scmp.ne.s32.totalorder %s1801_s6, %s2303_s1 }
 0x998   : > { %s2413_s16 = smov [#allocation4]  }
 0x999   : > { %p2305_p4 = pnand %p2304_p2, %p2538_p3  ;;  %s2307_s28 = sshll.u32 %s2413_s16, 4  ;;  %s2308_s28 = int_to_ptr.vmem [resolvable:$false] %s2307_s28 }
 0x99a   : > { %s2309_s18 = scalar_lea.vmem %s2308_s28, 256  ;;  %p2310_p6 = scmp.lt.s32.totalorder %s1801_s6, %s2308_s28 }
 0x99b   : > { %s2031_s29 = sshll.u32 %s2928_s21, 7  ;;  %p2306_p5 = pneg %p2305_p4 }
 0x99c   : > { %s2932_s25 = sand.u32 1, %s2929_s14   ;;  %p2311_p7 = scmp.lt.s32.totalorder %s2309_s18, %s2303_s1 }
 0x99d   : > { %s1798_s0 = scalar_lea.hbm %s2931_s3, %s2031_s29  ;;  %s1787_s22 = scalar_lea.sflag [#allocation5], %s2932_s25 }
 0x99e   : > { %p2312_p8 = por %p2311_p7, %p2310_p6 }
 0x9a0   : > { %p2313_p10 = pnand %p2312_p8, %p2306_p5 }
 0x9a2   : > { %2316 = shalt.err (!%p2313_p10)
}
 0x9a3   : > { %s2317_s4 = scalar_lea.hbm %s1798_s0, 128  ;;  %s2321_s27 = scalar_lea.hbm %s2931_s3, 256 }
 0x9a4   : > { %p2318_p11 = scmp.ne.s32.totalorder %s1798_s0, %s2317_s4  ;;  %p2322_p0 = scmp.lt.s32.totalorder %s1798_s0, %s2931_s3 }
 0x9a5   : > { %p2323_p1 = scmp.lt.s32.totalorder %s2321_s27, %s2317_s4 }
 0x9a6   : > { %p2319_p12 = pnand %p2318_p11, %p2538_p3 }
 0x9a7   : > { %p2324_p2 = por %p2323_p1, %p2322_p0 }
 0x9a8   : > { %p2320_p13 = pneg %p2319_p12 }
 0x9aa   : > { %p2325_p4 = pnand %p2324_p2, %p2320_p13 }
 0x9ac   : > { %2328 = shalt.err (!%p2325_p4)
}
 0x9ad   : > { %2194 = dma.vmem_to_hbm [thread:$0]  (%p2538_p3), %s1801_s6, 128, %s1798_s0, %s1787_s22  }
 0x9ae PF: > { %s2933_s24 = sld [smem:[#allocation14_spill]] }
 0x9af   : > { %s2934_s21 = sld [smem:[#allocation7_spill]] }
 0x9b4   : > { %p2200_p5 = scmp.ge.s32.totalorder %s2933_s24, 2 }
 0x9b5   : > { %s1812_s29 = sand.u32 1, %s2934_s21  }
 0x9b6   : > { %p2197_p6 = pnand %p2200_p5, %p2548_p9  ;;  %s1813_s20 = scalar_lea.sflag [#allocation5], %s1812_s29 }
 0x9b8   : > { %p2198_p7 = pneg %p2197_p6 }
 0x9ba   : > { %2362 = dma.done.wait (%p2198_p7), %s1813_s20, 128  }
 0x9bb   : > { %2364 = vsyncadd (%p2198_p7), %s1813_s20, 4294967168  ;;  %s27_s20 = sadd.s32 1, %s2933_s24   ;;  %s2936_s29 = sld [smem:[#allocation8_spill]] }
 0x9bc   : > { %p24_p8 = scmp.ge.s32.totalorder %s27_s20, 6   ;;  %s2937_s30 = sld [smem:[#allocation9_spill]] }
 0x9bd   : > { %s2938_s15 = sld [smem:[#allocation19_spill]] }
 0x9be   : > { %s2939_s16 = sld [smem:[#allocation12_spill]]  ;;  %26 = sbr.rel (!%p24_p8) target bundleno = 12 (0xc), region = 155 }
 0x9bf   : > { %s2940_s17 = sld [smem:[#allocation13_spill]] }
 0x9c0   : > { %s2941_s18 = sld [smem:[#allocation15_spill]] }
 0x9c1   : > { %s2942_s19 = sld [smem:[#allocation17_spill]] }
 0x9c3   :  { %1818 = vsyncpa [#allocation5], 1 }
 0x9c4   :  { %1820 = vsyncpa [#allocation5 + $0x1], 1 }

</bundles_post_ra>
